<compile_context>
chip_gen: v7x
topology: tpu7x:2x2x1
jax: 0.10.0
libtpu: 0.0.40
codegen_flags: <defaults>
</compile_context>

<pallas_src>
import math

import jax
import jax.numpy as jnp
from jax.experimental import pallas as pl
from jax.experimental.pallas import tpu as pltpu

M_MARGIN = 3  # angular margin m; cos(m*theta) below is the m=3 Chebyshev form

_VMEM_BUDGET_BYTES = 40 * 1024 * 1024  # conservative: fits v7x's 64 MiB / TC


def _angular_softmax_kernel(x_ref, w_ref, lab_ref, xn_ref, inv_xn_ref,
                            loss_ref, m_ref, l_ref, t_ref):
    c = pl.program_id(1)
    nc = pl.num_programs(1)
    bt = x_ref.shape[0]
    ct = w_ref.shape[1]

    # ---- init per-B-tile row state (start of the C sweep) ----
    @pl.when(c == 0)
    def _init_row_state():
        m_ref[...] = jnp.full_like(m_ref, -jnp.inf)
        l_ref[...] = jnp.zeros_like(l_ref)
        t_ref[...] = jnp.zeros_like(t_ref)

    # ---- full-depth matmul on the MXU: bf16 x bf16 -> f32 ----
    # Weights were column-normalized (in f32) in the wrapper, so these ARE the
    # logits; no per-column scale and no partial-sum accumulator needed.
    logits = jnp.dot(x_ref[...], w_ref[...],
                     preferred_element_type=jnp.float32)          # (bt, ct)

    labels = lab_ref[...]                                          # (bt, 1) int32
    col = jax.lax.broadcasted_iota(jnp.int32, (bt, ct), 1) + c * ct
    mask = col == labels                                           # (bt, ct)

    # logits[i, labels[i]] if the target column lives in this C tile, else 0.
    tgt_logit = jnp.sum(jnp.where(mask, logits, 0.0), axis=1, keepdims=True)

    x_norm = xn_ref[...]                                           # (bt, 1) ||x||
    inv_xn = inv_xn_ref[...]                                       # (bt, 1) 1/||x||

    cosv = jnp.clip(tgt_logit * inv_xn, -1.0, 1.0)
    # k = floor(acos(cos) / (pi/m)) WITHOUT acos (acos is monotone decreasing,
    # so k == #{ j in 1..m : cos <= cos(j*pi/m) }).  May differ from the acos
    # form by +-1 exactly at bin edges; phi is C^1-continuous there, so the
    # loss is unaffected.
    k = jnp.zeros_like(cosv)
    for j in range(1, M_MARGIN + 1):
        k = k + jnp.where(cosv <= math.cos(j * math.pi / M_MARGIN), 1.0, 0.0)
    cos_m_theta = 4.0 * cosv * cosv * cosv - 3.0 * cosv            # cos(3*theta)
    sign = 1.0 - 2.0 * jnp.mod(k, 2.0)                             # (-1)**k
    new_tgt = x_norm * (sign * cos_m_theta - 2.0 * k)              # (bt, 1)

    # Rewrite the target logit (a no-op if the target column is elsewhere).
    logits = jnp.where(mask, new_tgt, logits)

    # The target column lives in exactly one C tile; accumulate the modified
    # target logit and reuse it directly as the cross-entropy target term.
    in_tile = jnp.sum(jnp.where(mask, 1.0, 0.0), axis=1, keepdims=True)
    t_ref[...] += in_tile * new_tgt

    # Online (flash-style) logsumexp across C tiles.
    m_prev = m_ref[...]
    m_new = jnp.maximum(m_prev, jnp.max(logits, axis=1, keepdims=True))
    l_ref[...] = (jnp.exp(m_prev - m_new) * l_ref[...]
                  + jnp.sum(jnp.exp(logits - m_new), axis=1, keepdims=True))
    m_ref[...] = m_new

    # ---- write per-row loss after the last C tile of this B tile ----
    @pl.when(c == nc - 1)
    def _write_loss():
        loss_ref[...] = m_ref[...] + jnp.log(l_ref[...]) - t_ref[...]


def _pick_tile(dim, target, mult):
    """Largest divisor of `dim` that is <= target and a multiple of `mult`
    (or equal to `dim`, which always satisfies the Mosaic (8,128) rule)."""
    target = min(target, dim)
    for cand in range(target, 0, -1):
        if dim % cand == 0 and (cand % mult == 0 or cand == dim):
            return cand
    return dim


def _vmem_estimate(bt, ct, D):
    inputs = 2 * (bt * D + D * ct) * 2       # double-buffered bf16 x / w tiles
    temps = 2 * bt * ct * 4                  # f32 logits + exp working set
    small = 32 * bt * 4                      # labels / norms / scratch / output
    return inputs + temps + small


def _choose_tiles(B, C, D, block_b, block_c):
    # Keep >= 2 b-tiles when possible so the parallel axis can shard across
    # TensorCores (megacore on v6e, 2 TCs per chip on v7x).
    bt = _pick_tile(B, min(block_b, max(B // 2, 8)), 8)
    ct = _pick_tile(C, block_c, 128)
    # Shrink the class tile first, then the batch tile, to fit the VMEM budget.
    # Halving preserves divisibility and the 128/8 alignment.
    while _vmem_estimate(bt, ct, D) > _VMEM_BUDGET_BYTES and ct % 256 == 0:
        ct //= 2
    while _vmem_estimate(bt, ct, D) > _VMEM_BUDGET_BYTES and bt % 16 == 0:
        bt //= 2
    return bt, ct


def angular_softmax_loss(x, weights, labels, *, block_b=256, block_c=1024):
    """A-Softmax (m=3) mean cross-entropy loss.

    x: (B, D), weights: (D, C), labels: (B,) int.  The matmul runs on the MXU
    in bf16 with f32 accumulation; all post-matmul math stays in f32
    (v5e-friendly).  Weight-column normalization and the per-row ||x|| are
    hoisted into one-time f32 preprocessing here.
    """
    B, D = x.shape
    D2, C = weights.shape
    assert D == D2, (D, D2)

    x32 = x.astype(jnp.float32)
    w32 = weights.astype(jnp.float32)

    # One-time O(D*C) / O(B*D) preprocessing in f32 (hoisted out of the kernel).
    w_sq = jnp.sum(w32 * w32, axis=0, keepdims=True)               # (1, C)
    inv_wn = jax.lax.rsqrt(jnp.maximum(w_sq, 1e-24))
    w_n_bf = (w32 * inv_wn).astype(jnp.bfloat16)                   # normalized cols
    x_bf = x32.astype(jnp.bfloat16)

    x_sq = jnp.sum(x32 * x32, axis=1, keepdims=True)               # (B, 1)
    inv_xn = jax.lax.rsqrt(jnp.maximum(x_sq, 1e-24))
    x_norm = x_sq * inv_xn                                         # ||x||
    labels_2d = labels.astype(jnp.int32).reshape(B, 1)

    bt, ct = _choose_tiles(B, C, D, block_b, block_c)
    grid = (B // bt, C // ct)

    # TODO(synk): for very large D (x/w tiles no longer fitting VMEM even at
    # minimal bt/ct) re-introduce a D grid axis with block_d >= 512.
    per_row_loss = pl.pallas_call(
        _angular_softmax_kernel,
        out_shape=jax.ShapeDtypeStruct((B, 1), jnp.float32),
        grid_spec=pltpu.PrefetchScalarGridSpec(
            num_scalar_prefetch=0,
            grid=grid,
            in_specs=[
                pl.BlockSpec((bt, D), lambda b, c: (b, 0)),   # x (bf16), resident per b tile
                pl.BlockSpec((D, ct), lambda b, c: (0, c)),   # normalized w (bf16)
                pl.BlockSpec((bt, 1), lambda b, c: (b, 0)),   # labels
                pl.BlockSpec((bt, 1), lambda b, c: (b, 0)),   # ||x||
                pl.BlockSpec((bt, 1), lambda b, c: (b, 0)),   # 1/||x||
            ],
            out_specs=pl.BlockSpec((bt, 1), lambda b, c: (b, 0)),
            scratch_shapes=[
                pltpu.VMEM((bt, 1), jnp.float32),  # running max (online LSE)
                pltpu.VMEM((bt, 1), jnp.float32),  # running sum-exp (online LSE)
                pltpu.VMEM((bt, 1), jnp.float32),  # modified target logit
            ],
        ),
        compiler_params=pltpu.CompilerParams(
            dimension_semantics=("parallel", "arbitrary"),
            vmem_limit_bytes=64 * 1024 * 1024,
        ),
    )(x_bf, w_n_bf, labels_2d, x_norm, inv_xn)

    # fold the 1/B into the final (tiny) reduction outside the kernel.
    return jnp.mean(per_row_loss)


def _reference_loss(x, weights, labels):
    # Pure-JAX f32 reference mirroring the PyTorch forward, with the same bf16
    # rounding of the matmul operands that the kernel wrapper applies.
    w32 = weights.astype(jnp.float32)
    w_n = w32 / jnp.linalg.norm(w32, axis=0, keepdims=True)
    x_op = x.astype(jnp.bfloat16).astype(jnp.float32)
    w_op = w_n.astype(jnp.bfloat16).astype(jnp.float32)
    logits = x_op @ w_op
    x_norms = jnp.linalg.norm(x.astype(jnp.float32), axis=1)
    idx = jnp.arange(x.shape[0])
    tl = logits[idx, labels]
    cos = jnp.clip(tl / x_norms, -1.0, 1.0)
    angles = jnp.arccos(cos)
    k = jnp.floor(angles / (math.pi / M_MARGIN))
    cos_m = 4 * cos ** 3 - 3 * cos
    sign = jnp.where(jnp.mod(k, 2.0) == 0.0, 1.0, -1.0)
    phi = sign * cos_m - 2 * k
    logits = logits.at[idx, labels].set(x_norms * phi)
    logz = jax.nn.logsumexp(logits, axis=1)
    return jnp.mean(logz - logits[idx, labels])


if __name__ == "__main__":
    # Small but grid-exercising shapes.
    B, D, C = 64, 256, 512  # batch, in_features, output_classes

    key = jax.random.PRNGKey(0)
    k_x, k_w, k_l = jax.random.split(key, 3)

    x = jax.random.normal(k_x, (B, D), dtype=jnp.float32)
    labels = jax.random.randint(k_l, (B,), 0, C, dtype=jnp.int32)

    # Deterministic xavier_uniform_ init for weights (in_features, output_classes).
    bound = math.sqrt(6.0 / (D + C))
    weights = jax.random.uniform(k_w, (D, C), minval=-bound, maxval=bound,
                                 dtype=jnp.float32)

    ref = _reference_loss(x, weights, labels)

    # 1) small forced tiles -> grid (4 b-tiles, 4 c-tiles): exercises the
    #    online LSE / scratch persistence across class tiles.
    loss_small = angular_softmax_loss(x, weights, labels, block_b=16, block_c=128)
    loss_small = jax.block_until_ready(loss_small)
    assert jnp.allclose(loss_small, ref, rtol=2e-3, atol=2e-3), (loss_small, ref)

    # 2) default (performance) tiling.
    loss_default = angular_softmax_loss(x, weights, labels)
    loss_default = jax.block_until_ready(loss_default)
    assert jnp.allclose(loss_default, ref, rtol=2e-3, atol=2e-3), (loss_default, ref)

    print("KERNEL_OK")
</pallas_src>

<mosaic_0001>
module attributes {stable_mosaic.version = 11 : i64} {
  func.func @_angular_softmax_kernel(%arg0: i32, %arg1: i32, %arg2: memref<16x256xbf16, #tpu.memory_space<vmem>>, %arg3: memref<256x128xbf16, #tpu.memory_space<vmem>>, %arg4: memref<16x1xi32, #tpu.memory_space<vmem>>, %arg5: memref<16x1xf32, #tpu.memory_space<vmem>>, %arg6: memref<16x1xf32, #tpu.memory_space<vmem>>, %arg7: memref<16x1xf32, #tpu.memory_space<vmem>>, %arg8: memref<16x1xf32, #tpu.memory_space<vmem>>, %arg9: memref<16x1xf32, #tpu.memory_space<vmem>>, %arg10: memref<16x1xf32, #tpu.memory_space<vmem>>) attributes {dimension_semantics = [#tpu.dimension_semantics<parallel>, #tpu.dimension_semantics<arbitrary>], iteration_bounds = array<i64: 4, 4>, scalar_prefetch = 0 : i64, scratch_operands = 3 : i64, tpu.core_type = #tpu.core_type<tc>, window_params = [{transform_indices = @transform_0, window_bounds = array<i64: 16, 256>}, {transform_indices = @transform_1, window_bounds = array<i64: 256, 128>}, {transform_indices = @transform_2, window_bounds = array<i64: 16, 1>}, {transform_indices = @transform_3, window_bounds = array<i64: 16, 1>}, {transform_indices = @transform_4, window_bounds = array<i64: 16, 1>}, {transform_indices = @transform_5, window_bounds = array<i64: 16, 1>}]} {
    %c0_i32 = arith.constant 0 : i32
    %0 = arith.cmpi eq, %arg1, %c0_i32 : i32
    %1 = arith.extui %0 : i1 to i32
    %c0_i32_0 = arith.constant 0 : i32
    %2 = arith.cmpi ne, %1, %c0_i32_0 : i32
    scf.if %2 {
      %cst_51 = arith.constant 0xFF800000 : f32
      %104 = vector.broadcast %cst_51 : f32 to vector<16x1xf32>
      %c0_52 = arith.constant 0 : index
      %c0_53 = arith.constant 0 : index
      %105 = vector.load %arg8[%c0_52, %c0_53] : memref<16x1xf32, #tpu.memory_space<vmem>>, vector<16x1xf32>
      tpu.vector_store %arg8[%c0_52, %c0_53], %104 {strides = array<i32>} : memref<16x1xf32, #tpu.memory_space<vmem>>, vector<16x1xf32>,
      %cst_54 = arith.constant 0.000000e+00 : f32
      %106 = vector.broadcast %cst_54 : f32 to vector<16x1xf32>
      %c0_55 = arith.constant 0 : index
      %c0_56 = arith.constant 0 : index
      %107 = vector.load %arg9[%c0_55, %c0_56] : memref<16x1xf32, #tpu.memory_space<vmem>>, vector<16x1xf32>
      tpu.vector_store %arg9[%c0_55, %c0_56], %106 {strides = array<i32>} : memref<16x1xf32, #tpu.memory_space<vmem>>, vector<16x1xf32>,
      %cst_57 = arith.constant 0.000000e+00 : f32
      %108 = vector.broadcast %cst_57 : f32 to vector<16x1xf32>
      %c0_58 = arith.constant 0 : index
      %c0_59 = arith.constant 0 : index
      %109 = vector.load %arg10[%c0_58, %c0_59] : memref<16x1xf32, #tpu.memory_space<vmem>>, vector<16x1xf32>
      tpu.vector_store %arg10[%c0_58, %c0_59], %108 {strides = array<i32>} : memref<16x1xf32, #tpu.memory_space<vmem>>, vector<16x1xf32>,
    } else {
    }
    %c0 = arith.constant 0 : index
    %c0_1 = arith.constant 0 : index
    %3 = vector.load %arg2[%c0, %c0_1] : memref<16x256xbf16, #tpu.memory_space<vmem>>, vector<16x256xbf16>
    %c0_2 = arith.constant 0 : index
    %c0_3 = arith.constant 0 : index
    %4 = vector.load %arg3[%c0_2, %c0_3] : memref<256x128xbf16, #tpu.memory_space<vmem>>, vector<256x128xbf16>
    %cst = arith.constant dense<0.000000e+00> : vector<16x128xf32>
    %5 = tpu.matmul %3, %4, %cst {dimension_numbers = #tpu.dot_dimension_numbers<[1], [0], [0], [1], [0, 0, 1, 1], [], []>} : vector<16x256xbf16>, vector<256x128xbf16>, vector<16x128xf32> -> vector<16x128xf32>
    %c0_4 = arith.constant 0 : index
    %c0_5 = arith.constant 0 : index
    %6 = vector.load %arg4[%c0_4, %c0_5] : memref<16x1xi32, #tpu.memory_space<vmem>>, vector<16x1xi32>
    %7 = tpu.iota {dimensions = array<i32: 1>} : vector<16x128xi32>
    %c128_i32 = arith.constant 128 : i32
    %8 = arith.muli %arg1, %c128_i32 : i32
    %9 = vector.broadcast %8 : i32 to vector<16x128xi32>
    %10 = arith.addi %7, %9 : vector<16x128xi32>
    %11 = vector.broadcast %6 : vector<16x1xi32> to vector<16x128xi32>
    %12 = arith.cmpi eq, %10, %11 : vector<16x128xi32>
    %cst_6 = arith.constant 0.000000e+00 : f32
    %13 = vector.broadcast %cst_6 : f32 to vector<16x128xf32>
    %14 = arith.select %12, %5, %13 : vector<16x128xi1>, vector<16x128xf32>
    %cst_7 = arith.constant dense<0.000000e+00> : vector<16xf32>
    %15 = vector.multi_reduction <add>, %14, %cst_7 [1] : vector<16x128xf32> to vector<16xf32>
    %16 = vector.shape_cast %15 : vector<16xf32> to vector<16x1xf32>
    %c0_8 = arith.constant 0 : index
    %c0_9 = arith.constant 0 : index
    %17 = vector.load %arg5[%c0_8, %c0_9] : memref<16x1xf32, #tpu.memory_space<vmem>>, vector<16x1xf32>
    %c0_10 = arith.constant 0 : index
    %c0_11 = arith.constant 0 : index
    %18 = vector.load %arg6[%c0_10, %c0_11] : memref<16x1xf32, #tpu.memory_space<vmem>>, vector<16x1xf32>
    %19 = arith.mulf %16, %18 : vector<16x1xf32>
    %cst_12 = arith.constant -1.000000e+00 : f32
    %cst_13 = arith.constant 1.000000e+00 : f32
    %20 = vector.broadcast %cst_12 : f32 to vector<16x1xf32>
    %21 = arith.maximumf %20, %19 : vector<16x1xf32>
    %22 = vector.broadcast %cst_13 : f32 to vector<16x1xf32>
    %23 = arith.minimumf %22, %21 : vector<16x1xf32>
    %cst_14 = arith.constant 0.000000e+00 : f32
    %24 = vector.broadcast %cst_14 : f32 to vector<16x1xf32>
    %cst_15 = arith.constant 5.000000e-01 : f32
    %25 = vector.broadcast %cst_15 : f32 to vector<16x1xf32>
    %26 = arith.cmpf ole, %23, %25 : vector<16x1xf32>
    %cst_16 = arith.constant 1.000000e+00 : f32
    %cst_17 = arith.constant 0.000000e+00 : f32
    %27 = vector.broadcast %cst_16 : f32 to vector<16x1xf32>
    %28 = vector.broadcast %cst_17 : f32 to vector<16x1xf32>
    %29 = arith.select %26, %27, %28 : vector<16x1xi1>, vector<16x1xf32>
    %30 = arith.addf %24, %29 : vector<16x1xf32>
    %cst_18 = arith.constant -5.000000e-01 : f32
    %31 = vector.broadcast %cst_18 : f32 to vector<16x1xf32>
    %32 = arith.cmpf ole, %23, %31 : vector<16x1xf32>
    %cst_19 = arith.constant 1.000000e+00 : f32
    %cst_20 = arith.constant 0.000000e+00 : f32
    %33 = vector.broadcast %cst_19 : f32 to vector<16x1xf32>
    %34 = vector.broadcast %cst_20 : f32 to vector<16x1xf32>
    %35 = arith.select %32, %33, %34 : vector<16x1xi1>, vector<16x1xf32>
    %36 = arith.addf %30, %35 : vector<16x1xf32>
    %cst_21 = arith.constant -1.000000e+00 : f32
    %37 = vector.broadcast %cst_21 : f32 to vector<16x1xf32>
    %38 = arith.cmpf ole, %23, %37 : vector<16x1xf32>
    %cst_22 = arith.constant 1.000000e+00 : f32
    %cst_23 = arith.constant 0.000000e+00 : f32
    %39 = vector.broadcast %cst_22 : f32 to vector<16x1xf32>
    %40 = vector.broadcast %cst_23 : f32 to vector<16x1xf32>
    %41 = arith.select %38, %39, %40 : vector<16x1xi1>, vector<16x1xf32>
    %42 = arith.addf %36, %41 : vector<16x1xf32>
    %cst_24 = arith.constant 4.000000e+00 : f32
    %43 = vector.broadcast %cst_24 : f32 to vector<16x1xf32>
    %44 = arith.mulf %43, %23 : vector<16x1xf32>
    %45 = arith.mulf %44, %23 : vector<16x1xf32>
    %46 = arith.mulf %45, %23 : vector<16x1xf32>
    %cst_25 = arith.constant 3.000000e+00 : f32
    %47 = vector.broadcast %cst_25 : f32 to vector<16x1xf32>
    %48 = arith.mulf %47, %23 : vector<16x1xf32>
    %49 = arith.subf %46, %48 : vector<16x1xf32>
    %cst_26 = arith.constant 2.000000e+00 : f32
    %50 = vector.broadcast %cst_26 : f32 to vector<16x1xf32>
    %51 = arith.remf %42, %50 : vector<16x1xf32>
    %cst_27 = arith.constant 0.000000e+00 : f32
    %52 = vector.broadcast %cst_27 : f32 to vector<16x1xf32>
    %53 = arith.cmpf one, %51, %52 : vector<16x1xf32>
    %cst_28 = arith.constant 0.000000e+00 : f32
    %54 = vector.broadcast %cst_28 : f32 to vector<16x1xf32>
    %55 = arith.cmpf olt, %51, %54 : vector<16x1xf32>
    %cst_29 = arith.constant 0.000000e+00 : f32
    %56 = arith.cmpf olt, %cst_26, %cst_29 : f32
    %57 = vector.broadcast %56 : i1 to vector<16x1xi1>
    %58 = vector.broadcast %57 : vector<16x1xi1> to vector<16x1xi1>
    %59 = arith.xori %55, %58 : vector<16x1xi1>
    %60 = arith.andi %59, %53 : vector<16x1xi1>
    %61 = vector.broadcast %cst_26 : f32 to vector<16x1xf32>
    %62 = arith.addf %51, %61 : vector<16x1xf32>
    %63 = arith.select %60, %62, %51 : vector<16x1xi1>, vector<16x1xf32>
    %cst_30 = arith.constant 2.000000e+00 : f32
    %64 = vector.broadcast %cst_30 : f32 to vector<16x1xf32>
    %65 = arith.mulf %64, %63 : vector<16x1xf32>
    %cst_31 = arith.constant 1.000000e+00 : f32
    %66 = vector.broadcast %cst_31 : f32 to vector<16x1xf32>
    %67 = arith.subf %66, %65 : vector<16x1xf32>
    %68 = arith.mulf %67, %49 : vector<16x1xf32>
    %cst_32 = arith.constant 2.000000e+00 : f32
    %69 = vector.broadcast %cst_32 : f32 to vector<16x1xf32>
    %70 = arith.mulf %69, %42 : vector<16x1xf32>
    %71 = arith.subf %68, %70 : vector<16x1xf32>
    %72 = arith.mulf %17, %71 : vector<16x1xf32>
    %73 = vector.shape_cast %72 : vector<16x1xf32> to vector<16x1xf32>
    %74 = vector.broadcast %73 : vector<16x1xf32> to vector<16x128xf32>
    %75 = arith.select %12, %74, %5 : vector<16x128xi1>, vector<16x128xf32>
    %cst_33 = arith.constant 1.000000e+00 : f32
    %cst_34 = arith.constant 0.000000e+00 : f32
    %76 = vector.broadcast %cst_33 : f32 to vector<16x128xf32>
    %77 = vector.broadcast %cst_34 : f32 to vector<16x128xf32>
    %78 = arith.select %12, %76, %77 : vector<16x128xi1>, vector<16x128xf32>
    %cst_35 = arith.constant dense<0.000000e+00> : vector<16xf32>
    %79 = vector.multi_reduction <add>, %78, %cst_35 [1] : vector<16x128xf32> to vector<16xf32>
    %80 = vector.shape_cast %79 : vector<16xf32> to vector<16x1xf32>
    %c0_36 = arith.constant 0 : index
    %c0_37 = arith.constant 0 : index
    %81 = vector.load %arg10[%c0_36, %c0_37] : memref<16x1xf32, #tpu.memory_space<vmem>>, vector<16x1xf32>
    %82 = arith.mulf %80, %72 : vector<16x1xf32>
    %83 = arith.addf %81, %82 : vector<16x1xf32>
    %c0_38 = arith.constant 0 : index
    %c0_39 = arith.constant 0 : index
    %84 = vector.load %arg10[%c0_38, %c0_39] : memref<16x1xf32, #tpu.memory_space<vmem>>, vector<16x1xf32>
    tpu.vector_store %arg10[%c0_38, %c0_39], %83 {strides = array<i32>} : memref<16x1xf32, #tpu.memory_space<vmem>>, vector<16x1xf32>,
    %c0_40 = arith.constant 0 : index
    %c0_41 = arith.constant 0 : index
    %85 = vector.load %arg8[%c0_40, %c0_41] : memref<16x1xf32, #tpu.memory_space<vmem>>, vector<16x1xf32>
    %cst_42 = arith.constant dense<0xFF800000> : vector<16xf32>
    %86 = vector.multi_reduction <maximumf>, %75, %cst_42 [1] : vector<16x128xf32> to vector<16xf32>
    %87 = vector.shape_cast %86 : vector<16xf32> to vector<16x1xf32>
    %88 = arith.maximumf %85, %87 : vector<16x1xf32>
    %89 = arith.subf %85, %88 : vector<16x1xf32>
    %90 = math.exp %89 : vector<16x1xf32>
    %c0_43 = arith.constant 0 : index
    %c0_44 = arith.constant 0 : index
    %91 = vector.load %arg9[%c0_43, %c0_44] : memref<16x1xf32, #tpu.memory_space<vmem>>, vector<16x1xf32>
    %92 = arith.mulf %90, %91 : vector<16x1xf32>
    %93 = vector.broadcast %88 : vector<16x1xf32> to vector<16x128xf32>
    %94 = arith.subf %75, %93 : vector<16x128xf32>
    %95 = math.exp %94 : vector<16x128xf32>
    %cst_45 = arith.constant dense<0.000000e+00> : vector<16xf32>
    %96 = vector.multi_reduction <add>, %95, %cst_45 [1] : vector<16x128xf32> to vector<16xf32>
    %97 = vector.shape_cast %96 : vector<16xf32> to vector<16x1xf32>
    %98 = arith.addf %92, %97 : vector<16x1xf32>
    %c0_46 = arith.constant 0 : index
    %c0_47 = arith.constant 0 : index
    %99 = vector.load %arg9[%c0_46, %c0_47] : memref<16x1xf32, #tpu.memory_space<vmem>>, vector<16x1xf32>
    tpu.vector_store %arg9[%c0_46, %c0_47], %98 {strides = array<i32>} : memref<16x1xf32, #tpu.memory_space<vmem>>, vector<16x1xf32>,
    %c0_48 = arith.constant 0 : index
    %c0_49 = arith.constant 0 : index
    %100 = vector.load %arg8[%c0_48, %c0_49] : memref<16x1xf32, #tpu.memory_space<vmem>>, vector<16x1xf32>
    tpu.vector_store %arg8[%c0_48, %c0_49], %88 {strides = array<i32>} : memref<16x1xf32, #tpu.memory_space<vmem>>, vector<16x1xf32>,
    %c3_i32 = arith.constant 3 : i32
    %101 = arith.cmpi eq, %arg1, %c3_i32 : i32
    %102 = arith.extui %101 : i1 to i32
    %c0_i32_50 = arith.constant 0 : i32
    %103 = arith.cmpi ne, %102, %c0_i32_50 : i32
    scf.if %103 {
      %c0_51 = arith.constant 0 : index
      %c0_52 = arith.constant 0 : index
      %104 = vector.load %arg8[%c0_51, %c0_52] : memref<16x1xf32, #tpu.memory_space<vmem>>, vector<16x1xf32>
      %c0_53 = arith.constant 0 : index
      %c0_54 = arith.constant 0 : index
      %105 = vector.load %arg9[%c0_53, %c0_54] : memref<16x1xf32, #tpu.memory_space<vmem>>, vector<16x1xf32>
      %106 = math.log %105 : vector<16x1xf32>
      %107 = arith.addf %104, %106 : vector<16x1xf32>
      %c0_55 = arith.constant 0 : index
      %c0_56 = arith.constant 0 : index
      %108 = vector.load %arg10[%c0_55, %c0_56] : memref<16x1xf32, #tpu.memory_space<vmem>>, vector<16x1xf32>
      %109 = arith.subf %107, %108 : vector<16x1xf32>
      %c0_57 = arith.constant 0 : index
      %c0_58 = arith.constant 0 : index
      %110 = vector.load %arg7[%c0_57, %c0_58] : memref<16x1xf32, #tpu.memory_space<vmem>>, vector<16x1xf32>
      tpu.vector_store %arg7[%c0_57, %c0_58], %109 {strides = array<i32>} : memref<16x1xf32, #tpu.memory_space<vmem>>, vector<16x1xf32>,
    } else {
    }
    return
  }
  func.func @transform_0(%arg0: i32, %arg1: i32) -> (i32, i32) {
    %c0_i32 = arith.constant 0 : i32
    %c0_i32_0 = arith.constant 0 : i32
    return %arg0, %c0_i32 : i32, i32
  }
  func.func @transform_1(%arg0: i32, %arg1: i32) -> (i32, i32) {
    %c0_i32 = arith.constant 0 : i32
    %c0_i32_0 = arith.constant 0 : i32
    return %c0_i32, %arg1 : i32, i32
  }
  func.func @transform_2(%arg0: i32, %arg1: i32) -> (i32, i32) {
    %c0_i32 = arith.constant 0 : i32
    %c0_i32_0 = arith.constant 0 : i32
    return %arg0, %c0_i32 : i32, i32
  }
  func.func @transform_3(%arg0: i32, %arg1: i32) -> (i32, i32) {
    %c0_i32 = arith.constant 0 : i32
    %c0_i32_0 = arith.constant 0 : i32
    return %arg0, %c0_i32 : i32, i32
  }
  func.func @transform_4(%arg0: i32, %arg1: i32) -> (i32, i32) {
    %c0_i32 = arith.constant 0 : i32
    %c0_i32_0 = arith.constant 0 : i32
    return %arg0, %c0_i32 : i32, i32
  }
  func.func @transform_5(%arg0: i32, %arg1: i32) -> (i32, i32) {
    %c0_i32 = arith.constant 0 : i32
    %c0_i32_0 = arith.constant 0 : i32
    return %arg0, %c0_i32 : i32, i32
  }
}

</mosaic_0001>

<bundles_post_ra>
// kernel: tpu_custom_call.1
= control target key start
LH: loop header
LB: loop body
LE: loop exit
PB: predicated region body
PF: predicated region fallthrough
CT: control target
= control target key end

     0   :  { %s2096_s0 = inlined_call_operand.hbm [shape: bf16[64,256], index: 0, kind: input, shape index: {}]   ;;  %s2097_s1 = inlined_call_operand.hbm [shape: bf16[256,512], index: 1, kind: input, shape index: {}]   ;;  %s2098_s2 = inlined_call_operand.hbm [shape: s32[64,1], index: 2, kind: input, shape index: {}]   ;;  %s2099_s3 = inlined_call_operand.hbm [shape: f32[64,1], index: 3, kind: input, shape index: {}]   ;;  %s2100_s4 = inlined_call_operand.hbm [shape: f32[64,1], index: 4, kind: input, shape index: {}]   ;;  %s2101_s5 = inlined_call_operand.hbm [shape: f32[64,1], index: 5, kind: output, shape index: {}]  }
   0x1   :  { %2127 = sst [smem:[#allocation33_spill]] %s2096_s0 }
   0x2   :  { %2128 = sst [smem:[#allocation34_spill]] %s2097_s1 }
   0x3   :  { %2129 = sst [smem:[#allocation35_spill]] %s2099_s3 }
   0x4   :  { %2130 = sst [smem:[#allocation36_spill]] %s2101_s5 }
   0x5   :  { %10 = vsyncpa [#allocation6], 0 }
   0x6   :  { %12 = vsyncpa [#allocation6 + $0x1], 0 }
   0x7   :  { %13 = vsyncpa [#allocation9], 0 }
   0x8   :  { %15 = vsyncpa [#allocation9 + $0x1], 0 }
   0x9   :  { %16 = vsyncpa [#allocation12], 0 }
   0xa   :  { %18 = vsyncpa [#allocation12 + $0x1], 0 }
   0xb   :  { %19 = vsyncpa [#allocation7], 0 }
   0xc   :  { %21 = vsyncpa [#allocation7 + $0x1], 0  ;;  %s1566_s18 = smov 0   ;;  %s1568_s19 = smov 0  }
   0xd   :  { %s1570_s20 = smov 0   ;;  %s1572_s21 = smov 0  }
   0xe   :  { %s1574_s22 = smov 0   ;;  %s1576_s23 = smov 0  }
   0xf   :  { %s1578_s24 = smov 0   ;;  %s1580_s25 = smov 0  }
  0x10   :  { %s1582_s26 = smov 0   ;;  %s1584_s27 = smov 0  }
  0x11   :  { %s1586_s28 = smov 0  }
  0x12 LB: > { %2131 = sst [smem:[#allocation20_spill]] %s1485_s20  ;;  %s1620_s29 = sadd.s32 4294967295, %s1517_s28   ;;  %s1517_s28 = sphi %s1586_s28, %s27_s28   ;;  %s1513_s27 = sphi %s1584_s27, %s2187_s27   ;;  %s1509_s26 = sphi %s1582_s26, %s2180_s26   ;;  %s1505_s25 = sphi %s1580_s25, %s2179_s25   ;;  %s1501_s24 = sphi %s1578_s24, %s2186_s24   ;;  %s1497_s23 = sphi %s1576_s23, %s2177_s23   ;;  %s1493_s22 = sphi %s1574_s22, %s2185_s22   ;;  %s1489_s21 = sphi %s1572_s21, %s2184_s21   ;;  %s1485_s20 = sphi %s1570_s20, %s2175_s20   ;;  %s1481_s19 = sphi %s1568_s19, %s2183_s19   ;;  %s1477_s18 = sphi %s1566_s18, %s2182_s18  }
  0x13   : > { %2132 = sst [smem:[#allocation21_spill]] %s1489_s21  ;;  %s36_s30 = sadd.s32 1, %s1509_s26 }
  0x14   : > { %2133 = sst [smem:[#allocation22_spill]] %s1497_s23  ;;  %p1623_p0 = scmp.ge.s32.totalorder %s36_s30, 4 }
  0x15   : > { %2134 = sst [smem:[#allocation23_spill]] %s1505_s25  ;;  %p2106_p1 = scmp.eq.s32.totalorder %s1517_s28, 0 }
  0x16   : > { %2135 = sst [smem:[#allocation24_spill]] %s1509_s26  ;;  %p2104_p2 = scmp.eq.s32.totalorder %s1620_s29, 0 }
  0x17   : > { %2136 = sst [smem:[#allocation25_spill]] %s1513_s27  ;;  %s72_s7 = sadd.s32 1, %s1485_s20 }
  0x18   : > { %2137 = sst [smem:[#allocation26_spill]] %s1517_s28  ;;  %s2189_s30 = smov (%p1623_p0, %s36_s30), 0 }
  0x19   : > { %2139 = sst [smem:[#allocation27_spill]] %s2189_s30  ;;  %p79_p3 = scmp.ne.s32.totalorder %s1485_s20, %s1481_s19 }
  0x1a   : > { %p85_p4 = scmp.ne.s32.totalorder %s1481_s19, %s1477_s18  ;;  %s69_s8 = ssub.s32 %s1509_s26, %s2189_s30 }
  0x1b   : > { %p70_p5 = scmp.eq.s32.totalorder %s69_s8, 0  ;;  %p81_p6 = por %p79_p3, %p2106_p1 }
  0x1c   : > { %p1643_p7 = por %p85_p4, %p2104_p2  ;;  %p2103_p8 = scmp.lt.s32.totalorder %s1517_s28, 16 }
  0x1d   : > { %s1649_s10 = scalar_select %p70_p5, %s1485_s20, %s72_s7  }
  0x1e   : > { %s2140_s9 = scalar_select %p1643_p7, 1, 0 }
  0x1f   : > { %2141 = sst [smem:[#allocation28_spill]] %s1649_s10  ;;  %s2105_s11 = sand.u32 1, %s1517_s28  }
  0x20   : > { %s237_s12 = sand.u32 1, %s1485_s20   ;;  %s994_s14 = sshll.u32 %s1509_s26, 6 }
  0x21   : > { %s993_s13 = sshll.u32 %s237_s12, 7  ;;  %s2142_s1 = sld [smem:[#allocation34_spill]] }
  0x22   : > { %s239_s18 = scalar_lea.vmem [#allocation8], %s993_s13  ;;  %p1663_p9 = pnand %p2103_p8, %p81_p6 }
  0x23   : > { %s245_s8 = sshll.u32 %s239_s18, 4  ;;  %s1669_s12 = scalar_lea.sflag [#allocation9], %s2105_s11  ;;  %s1659_s8 = int_to_ptr.vmem [resolvable:$true] %s245_s8 }
  0x24   : > { %p1235_p11 = pneg %p1663_p9 }
  0x27   : > { %s1657_s17 = scalar_lea.hbm %s2142_s1, %s994_s14  ;;  %s1238_s16 = scalar_lea.hbm %s2142_s1, 8192 }
  0x28   : > { %s1233_s14 = scalar_lea.hbm %s1657_s17, 2048  ;;  %p1239_p3 = scmp.lt.u32.totalorder %s1657_s17, %s2142_s1 }
  0x29   : > { %p1234_p10 = scmp.ne.s32.totalorder %s1657_s17, %s1233_s14  ;;  %p1240_p4 = scmp.lt.u32.totalorder %s1238_s16, %s1233_s14 }
  0x2a   : > { %p1242_p6 = scmp.lt.u32.totalorder %s1233_s14, %s1657_s17 }
  0x2b   : > { %p1236_p12 = pnand %p1235_p11, %p1234_p10  ;;  %p1241_p5 = por %p1240_p4, %p1239_p3 }
  0x2d   : > { %p1237_p13 = pneg %p1236_p12  ;;  %p1243_p8 = por %p1242_p6, %p1241_p5 }
  0x2f   : > { %p1244_p2 = pnand %p1243_p8, %p1237_p13 }
  0x31   : > { %1247 = shalt.err (!%p1244_p2)
}
  0x32   : > { %s1248_s11 = scalar_lea.vmem %s1659_s8, 2048  ;;  %s1519_s13 = smov [#allocation8]  }
  0x33   : > { %p1249_p10 = scmp.ne.s32.totalorder %s1659_s8, %s1248_s11  ;;  %s1253_s15 = sshll.u32 %s1519_s13, 4  ;;  %s1254_s15 = int_to_ptr.vmem [resolvable:$false] %s1253_s15 }
  0x34   : > { %s1255_s30 = scalar_lea.vmem %s1254_s15, 4096  ;;  %p1256_p7 = scmp.lt.s32.totalorder %s1659_s8, %s1254_s15 }
  0x35   : > { %p1251_p12 = pnand %p1249_p10, %p1235_p11  ;;  %p1257_p3 = scmp.lt.s32.totalorder %s1255_s30, %s1248_s11 }
  0x37   : > { %p1252_p1 = pneg %p1251_p12  ;;  %p1258_p4 = por %p1257_p3, %p1256_p7 }
  0x39   : > { %p1259_p5 = pnand %p1258_p4, %p1252_p1 }
  0x3b   : > { %1262 = shalt.err (!%p1259_p5)
}
  0x3c   : > { %s1520_s14 = smov 256   ;;  %s1521_s11 = smov 64  }
  0x3d   : > { %s1522_s16 = smov 4   ;;  %p1004_p1 = scmp.ge.s32.totalorder %s1517_s28, 1 }
  0x3e   : > { %1085 = dma.hbm_to_vmem [thread:$0]  (!%p1663_p9), %s1657_s17, 2048, %s1659_s8, %s1669_s12, %s1520_s14, %s1521_s11, %s1522_s16  }
  0x3f   : > { %p316_p2 = scmp.lt.s32.totalorder %s1517_s28, 17  ;;  %s986_s13 = sadd.s32 4294967294, %s1517_s28  }
  0x40   : > { %s39_s15 = sadd.s32 1, %s1513_s27  ;;  %s46_s30 = sadd.s32 1, %s1497_s23 }
  0x41   : > { %p1699_p7 = pnand %p1004_p1, %p316_p2  ;;  %s2191_s15 = smov (!%p1623_p0, %s39_s15), %s1513_s27 }
  0x42   : > { %p53_p8 = scmp.ne.s32.totalorder %s1497_s23, %s1493_s22  ;;  %p59_p11 = scmp.ne.s32.totalorder %s1493_s22, %s1489_s21 }
  0x43   : > { %s2144_s18 = scalar_select %p1699_p7, 1, 0 }
  0x44   : > { %p41_p9 = scmp.ge.s32.totalorder %s2191_s15, 4  ;;  %p187_p13 = scmp.eq.s32.totalorder %s1620_s29, 15 }
  0x45   : > { %p2145_p6 = scmp.eq.s32.totalorder %s1517_s28, 0  ;;  %p2146_p12 = scmp.eq.s32.totalorder %s1620_s29, 0 }
  0x46   : > { %s2193_s15 = smov (%p41_p9, %s2191_s15), 0  ;;  %p1724_p4 = por %p187_p13, %p53_p8 }
  0x47   : > { %p55_p10 = por %p2145_p6, %p53_p8  ;;  %p1718_p3 = por %p2146_p12, %p59_p11 }
  0x48   : > { %2148 = sst [smem:[#allocation29_spill]] %s2193_s15  ;;  %p193_p0 = scmp.eq.s32.totalorder %s986_s13, 15 }
  0x49   : > { %s2147_s17 = scalar_select %p1718_p3, 1, 0 }
  0x4a   : > { %s2149_s6 = scalar_select %p1724_p4, 1, 0 }
  0x4b   : > { %s43_s8 = ssub.s32 %s1513_s27, %s2193_s15  ;;  %s2110_s7 = sand.u32 1, %s1497_s23  }
  0x4c   : > { %2150 = sst [smem:[#allocation30_spill]] %s2149_s6  ;;  %p44_p5 = scmp.eq.s32.totalorder %s43_s8, 0 }
  0x4d   : > { %p1731_p1 = por %p193_p0, %p59_p11  ;;  %s1737_s11 = sshll.u32 %s2110_s7, 4 }
  0x4e   : > { %s1740_s16 = sshll.u32 %s1513_s27, 8  ;;  %p2154_p2 = scmp.lt.s32.totalorder %s1517_s28, 16 }
  0x4f   : > { %s2151_s14 = scalar_select %p1731_p1, 1, 0 }
  0x50   : > { %s1743_s1 = scalar_select %p44_p5, %s1497_s23, %s46_s30  }
  0x51   : > { %2152 = sst [smem:[#allocation31_spill]] %s2151_s14  ;;  %p1747_p8 = pnand %p2154_p2, %p55_p10 }
  0x52   : > { %2153 = sst [smem:[#allocation32_spill]] %s1743_s1  ;;  %s2156_s3 = sld [smem:[#allocation35_spill]] }
  0x53   : > { %s280_s7 = scalar_lea.vmem [#allocation11], %s1737_s11  ;;  %s2157_s30 = sand.u32 1, %s1517_s28  }
  0x54   : > { %s287_s27 = sshll.u32 %s280_s7, 4  ;;  %s1762_s1 = scalar_lea.sflag [#allocation12], %s2157_s30  ;;  %s1758_s27 = int_to_ptr.vmem [resolvable:$true] %s287_s27 }
  0x55   : > { %p1768_p9 = pneg %p1747_p8 }
  0x58   : > { %s1755_s15 = scalar_lea.hbm %s2156_s3, %s1740_s16  ;;  %s1268_s7 = scalar_lea.hbm %s2156_s3, 1024 }
  0x59   : > { %s1263_s10 = scalar_lea.hbm %s1755_s15, 256  ;;  %p1269_p10 = scmp.lt.u32.totalorder %s1755_s15, %s2156_s3 }
  0x5a   : > { %p1264_p11 = scmp.ne.s32.totalorder %s1755_s15, %s1263_s10  ;;  %p1270_p12 = scmp.lt.u32.totalorder %s1268_s7, %s1263_s10 }
  0x5b   : > { %p1272_p5 = scmp.lt.u32.totalorder %s1263_s10, %s1755_s15 }
  0x5c   : > { %p1266_p13 = pnand %p1768_p9, %p1264_p11  ;;  %p1271_p0 = por %p1270_p12, %p1269_p10 }
  0x5e   : > { %p1267_p6 = pneg %p1266_p13  ;;  %p1273_p2 = por %p1272_p5, %p1271_p0 }
  0x60   : > { %p1274_p1 = pnand %p1273_p2, %p1267_p6 }
  0x62   : > { %1277 = shalt.err (!%p1274_p1)
}
  0x63   : > { %s1278_s30 = scalar_lea.vmem %s1758_s27, 256  ;;  %s1523_s13 = smov [#allocation11]  }
  0x64   : > { %p1279_p11 = scmp.ne.s32.totalorder %s1758_s27, %s1278_s30  ;;  %s1283_s8 = sshll.u32 %s1523_s13, 4  ;;  %s1284_s8 = int_to_ptr.vmem [resolvable:$false] %s1283_s8 }
  0x65   : > { %s1285_s21 = scalar_lea.vmem %s1284_s8, 512  ;;  %p1286_p3 = scmp.lt.s32.totalorder %s1758_s27, %s1284_s8 }
  0x66   : > { %p1281_p13 = pnand %p1279_p11, %p1768_p9  ;;  %p1287_p7 = scmp.lt.s32.totalorder %s1285_s21, %s1278_s30 }
  0x68   : > { %p1282_p4 = pneg %p1281_p13  ;;  %p1288_p10 = por %p1287_p7, %p1286_p3 }
  0x6a   : > { %p1289_p12 = pnand %p1288_p10, %p1282_p4 }
  0x6c   : > { %1292 = shalt.err (!%p1289_p12)
}
  0x6d   : > { %s2122_s10 = smov 128   ;;  %s2124_s14 = smov 8  }
  0x6e   : > { %1091 = dma.hbm_to_vmem [thread:$0]  (!%p1747_p8), %s1755_s15, 256, %s1758_s27, %s1762_s1, %s2122_s10, %s2122_s10, %s2124_s14  }
  0x6f   : > { %s2159_s0 = sld [smem:[#allocation33_spill]]  ;;  %s217_s8 = scalar_lea.vmem [#allocation5], %s1737_s11 }
  0x70   : > { %s225_s21 = sshll.u32 %s217_s8, 4  ;;  %s1808_s5 = scalar_lea.hbm %s2098_s2, %s1740_s16  ;;  %s1802_s21 = int_to_ptr.vmem [resolvable:$true] %s225_s21 }
  0x71   : > { %s2160_s6 = sand.u32 1, %s1497_s23  }
  0x72   : > { %s1812_s27 = scalar_lea.sflag [#allocation6], %s2160_s6 }
  0x75   : > { %s1799_s13 = scalar_lea.hbm %s2159_s0, %s1740_s16  ;;  %s1298_s10 = scalar_lea.hbm %s2159_s0, 1024 }
  0x76   : > { %s1293_s15 = scalar_lea.hbm %s1799_s13, 256  ;;  %p1299_p1 = scmp.lt.u32.totalorder %s1799_s13, %s2159_s0 }
  0x77   : > { %p1294_p7 = scmp.ne.s32.totalorder %s1799_s13, %s1293_s15  ;;  %p1300_p6 = scmp.lt.u32.totalorder %s1298_s10, %s1293_s15 }
  0x78   : > { %p1302_p5 = scmp.lt.u32.totalorder %s1293_s15, %s1799_s13 }
  0x79   : > { %p1296_p3 = pnand %p1294_p7, %p1768_p9  ;;  %p1301_p0 = por %p1300_p6, %p1299_p1 }
  0x7b   : > { %p1297_p4 = pneg %p1296_p3  ;;  %p1303_p2 = por %p1302_p5, %p1301_p0 }
  0x7d   : > { %p1304_p11 = pnand %p1303_p2, %p1297_p4 }
  0x7f   : > { %1307 = shalt.err (!%p1304_p11)
}
  0x80   : > { %s1308_s3 = scalar_lea.vmem %s1802_s21, 256  ;;  %s1526_s28 = smov [#allocation5]  }
  0x81   : > { %p1309_p13 = scmp.ne.s32.totalorder %s1802_s21, %s1308_s3  ;;  %s1313_s6 = sshll.u32 %s1526_s28, 4  ;;  %s1314_s6 = int_to_ptr.vmem [resolvable:$false] %s1313_s6 }
  0x82   : > { %s1315_s14 = scalar_lea.vmem %s1314_s6, 512  ;;  %p1316_p7 = scmp.lt.s32.totalorder %s1802_s21, %s1314_s6 }
  0x83   : > { %p1311_p10 = pnand %p1309_p13, %p1768_p9  ;;  %p1317_p3 = scmp.lt.s32.totalorder %s1315_s14, %s1308_s3 }
  0x85   : > { %p1312_p12 = pneg %p1311_p10  ;;  %p1318_p1 = por %p1317_p3, %p1316_p7 }
  0x87   : > { %p1319_p6 = pnand %p1318_p1, %p1312_p12 }
  0x89   : > { %1322 = shalt.err (!%p1319_p6)
}
  0x8a   : > { %s2161_s10 = smov 8   ;;  %s2162_s15 = smov 128  }
  0x8b   : > { %1082 = dma.hbm_to_vmem [thread:$0]  (!%p1747_p8), %s1799_s13, 256, %s1802_s21, %s1812_s27, %s2162_s15, %s2162_s15, %s2161_s10  }
  0x8c   : > { %s259_s7 = scalar_lea.vmem [#allocation10], %s1737_s11  ;;  %s1846_s28 = scalar_lea.hbm %s2100_s4, %s1740_s16 }
  0x8d   : > { %s266_s30 = sshll.u32 %s259_s7, 4  ;;  %s1323_s6 = scalar_lea.hbm %s1808_s5, 256  ;;  %s1840_s30 = int_to_ptr.vmem [resolvable:$true] %s266_s30 }
  0x8e   : > { %p1324_p4 = scmp.ne.s32.totalorder %s1808_s5, %s1323_s6  ;;  %s1328_s23 = scalar_lea.hbm %s2098_s2, 1024 }
  0x8f   : > { %p1329_p2 = scmp.lt.u32.totalorder %s1808_s5, %s2098_s2  ;;  %p1330_p11 = scmp.lt.u32.totalorder %s1328_s23, %s1323_s6 }
  0x90   : > { %p1326_p0 = pnand %p1324_p4, %p1768_p9  ;;  %p1332_p10 = scmp.lt.u32.totalorder %s1323_s6, %s1808_s5 }
  0x91   : > { %p1331_p13 = por %p1330_p11, %p1329_p2 }
  0x92   : > { %p1327_p5 = pneg %p1326_p0 }
  0x93   : > { %p1333_p12 = por %p1332_p10, %p1331_p13 }
  0x95   : > { %p1334_p7 = pnand %p1333_p12, %p1327_p5 }
  0x97   : > { %1337 = shalt.err (!%p1334_p7)
}
  0x98   : > { %s1338_s16 = scalar_lea.vmem %s1840_s30, 256  ;;  %s1527_s0 = smov [#allocation10]  }
  0x99   : > { %p1339_p3 = scmp.ne.s32.totalorder %s1840_s30, %s1338_s16  ;;  %s1343_s21 = sshll.u32 %s1527_s0, 4  ;;  %s1344_s21 = int_to_ptr.vmem [resolvable:$false] %s1343_s21 }
  0x9a   : > { %s1345_s25 = scalar_lea.vmem %s1344_s21, 512  ;;  %p1346_p4 = scmp.lt.s32.totalorder %s1840_s30, %s1344_s21 }
  0x9b   : > { %p1341_p1 = pnand %p1339_p3, %p1768_p9  ;;  %p1347_p0 = scmp.lt.s32.totalorder %s1345_s25, %s1338_s16 }
  0x9d   : > { %p1342_p6 = pneg %p1341_p1  ;;  %p1348_p2 = por %p1347_p0, %p1346_p4 }
  0x9f   : > { %p1349_p11 = pnand %p1348_p2, %p1342_p6 }
  0xa1   : > { %1352 = shalt.err (!%p1349_p11)
}
  0xa2   : > { %1088 = dma.hbm_to_vmem [thread:$0]  (!%p1747_p8), %s1808_s5, 256, %s1840_s30, %s1669_s12, %s2162_s15, %s2162_s15, %s2161_s10  }
  0xa3   : > { %s301_s23 = scalar_lea.vmem [#allocation13], %s1737_s11  ;;  %s1353_s7 = scalar_lea.hbm %s1846_s28, 256 }
  0xa4   : > { %s308_s27 = sshll.u32 %s301_s23, 4  ;;  %p1354_p5 = scmp.ne.s32.totalorder %s1846_s28, %s1353_s7  ;;  %s1874_s27 = int_to_ptr.vmem [resolvable:$true] %s308_s27 }
  0xa5   : > { %s1358_s6 = scalar_lea.hbm %s2100_s4, 1024  ;;  %p1359_p12 = scmp.lt.u32.totalorder %s1846_s28, %s2100_s4 }
  0xa6   : > { %p1356_p13 = pnand %p1354_p5, %p1768_p9  ;;  %p1360_p7 = scmp.lt.u32.totalorder %s1358_s6, %s1353_s7 }
  0xa7   : > { %p1362_p1 = scmp.lt.u32.totalorder %s1353_s7, %s1846_s28 }
  0xa8   : > { %p1357_p10 = pneg %p1356_p13  ;;  %p1361_p3 = por %p1360_p7, %p1359_p12 }
  0xaa   : > { %p1363_p6 = por %p1362_p1, %p1361_p3 }
  0xac   : > { %p1364_p4 = pnand %p1363_p6, %p1357_p10 }
  0xae   : > { %1367 = shalt.err (!%p1364_p4)
}
  0xaf   : > { %s1368_s5 = scalar_lea.vmem %s1874_s27, 256  ;;  %s1528_s12 = smov [#allocation13]  }
  0xb0   : > { %p1369_p0 = scmp.ne.s32.totalorder %s1874_s27, %s1368_s5  ;;  %s1373_s11 = sshll.u32 %s1528_s12, 4  ;;  %s1374_s11 = int_to_ptr.vmem [resolvable:$false] %s1373_s11 }
  0xb1   : > { %s1375_s30 = scalar_lea.vmem %s1374_s11, 512  ;;  %p1376_p5 = scmp.lt.s32.totalorder %s1874_s27, %s1374_s11 }
  0xb2   : > { %p1371_p2 = pnand %p1369_p0, %p1768_p9  ;;  %p1377_p13 = scmp.lt.s32.totalorder %s1375_s30, %s1368_s5 }
  0xb4   : > { %p1372_p11 = pneg %p1371_p2  ;;  %p1378_p12 = por %p1377_p13, %p1376_p5 }
  0xb6   : > { %p1379_p7 = pnand %p1378_p12, %p1372_p11 }
  0xb8   : > { %1382 = shalt.err (!%p1379_p7)
}
  0xb9   : > { %1094 = dma.hbm_to_vmem [thread:$0]  (!%p1747_p8), %s1846_s28, 256, %s1874_s27, %s1762_s1, %s2162_s15, %s2162_s15, %s2161_s10  }
  0xba   : > { %p2163_p9 = scmp.ne.s32.totalorder %s2144_s18, 0 }
  0xbb   : > { %s1904_s20 = sand.u32 (!%p2163_p9), 1, %s1493_s22   ;;  %p2164_p10 = scmp.ne.s32.totalorder (!%p2163_p9), %s2147_s17, 0 }
  0xbc   : > { %320 = sbr.rel (%p2163_p9) target bundleno = 1264 (0x4f0), region = 40  ;;  %s1907_s16 = sshll.u32 (!%p2163_p9), %s1904_s20, 4 }
  0xbd   : > { %s323_s26 = scalar_lea.sflag (!%p2163_p9), [#allocation6], %s1904_s20  ;;  %s326_s0 = scalar_lea.vmem (!%p2163_p9), [#allocation5], %s1907_s16 }
  0xc3   : > { %1456 = dma.done.wait (%p2164_p10), %s323_s26, 256  }
  0xc4   : > { %1458 = vsyncadd (%p2164_p10), %s323_s26, 4294967040  ;;  %s331_s1 = sand.u32 1, %s1620_s29   ;;  %s333_s18 = sand.u32 1, %s1481_s19  }
  0xc5   : > { %s1006_s10 = sshll.u32 %s333_s18, 7  ;;  %s332_s15 = scalar_lea.sflag [#allocation9], %s331_s1 }
  0xc6   : > { %s1917_s28 = scalar_lea.vmem [#allocation8], %s1006_s10  ;;  %p2165_p8 = scmp.ne.s32.totalorder %s2140_s9, 0 }
  0xc8   : > { %1460 = dma.done.wait (%p2165_p8), %s332_s15, 2048  }
  0xc9   : > { %1462 = vsyncadd (%p2165_p8), %s332_s15, 4294965248  ;;  %s344_s21 = scalar_lea.vmem [#allocation10], %s1907_s16 }
  0xca   : > { %1464 = dma.done.wait (%p2164_p10), %s332_s15, 256  }
  0xcb   : > { %1466 = vsyncadd (%p2164_p10), %s332_s15, 4294967040  ;;  %s350_s29 = scalar_lea.sflag [#allocation12], %s331_s1  ;;  %s353_s25 = scalar_lea.vmem [#allocation11], %s1907_s16 }
  0xcc   : > { %1468 = dma.done.wait (%p2164_p10), %s350_s29, 512  }
  0xcd   : > { %1470 = vsyncadd (%p2164_p10), %s350_s29, 4294966784  ;;  %s362_s9 = scalar_lea.vmem [#allocation13], %s1907_s16  ;;  %s1935_s23 = scalar_lea.vmem [#allocation14], %s1907_s16 }
  0xce   : > { %p1011_p3 = scmp.ne.s32.totalorder %s1501_s24, 0 }
  0xcf   : > { %vm419_vm0 = vcmask (!%p1011_p3), 7168   ;;  %v1529_v0 = vmov (!%p1011_p3), -inf   ;;  %v1530_v1 = vmov (!%p1011_p3), 0.0  }
  0xd0   : > { %418 = sbr.rel (%p1011_p3) target bundleno = 215 (0xd7), region = 64  ;;  %420 = vst.msk [vmem:[#allocation2] sm:$0xff] (!%p1011_p3), %vm419_vm0, %v1529_v0  ;;  %421 = vst.msk [vmem:[#allocation2 + $0x8] sm:$0xff] (!%p1011_p3), %vm419_vm0, %v1529_v0 }
  0xd1   : > { %422 = vst.msk [vmem:[#allocation3] sm:$0xff] (!%p1011_p3), %vm419_vm0, %v1530_v1  ;;  %423 = vst.msk [vmem:[#allocation3 + $0x8] sm:$0xff] (!%p1011_p3), %vm419_vm0, %v1530_v1 }
  0xd2   : > { %424 = vst.msk [vmem:[#allocation4] sm:$0xff] (!%p1011_p3), %vm419_vm0, %v1530_v1  ;;  %425 = vst.msk [vmem:[#allocation4 + $0x8] sm:$0xff] (!%p1011_p3), %vm419_vm0, %v1530_v1 }
  0xd7 PF: > { %v1202_v2 = vld [vmem:[%s1917_s28 + $0x40] sm:$0xff]   ;;  %v1531_v4 = vmov 0   ;;  %v1204_v5 = vld [vmem:[%s1917_s28 + $0x48] sm:$0xff]   ;;  %v1206_v7 = vld [vmem:[%s1917_s28 + $0x50] sm:$0xff]   ;;  %v609_v23 = vlaneseq  ;;  %s1030_s17 = sshll.u32 %s1501_s24, 7  ;;  %v1532_v44 = vmov 0.0  }
  0xd8   : > { %v1203_v3 = vld [vmem:[%s1917_s28] sm:$0xff]   ;;  %1200 = vset.pattern.permute.xlu0 %v1531_v4  ;;  %1201 = vset.pattern.permute.xlu1 %v1531_v4  ;;  %v1205_v6 = vld [vmem:[%s1917_s28 + $0x8] sm:$0xff]   ;;  %v1207_v8 = vld [vmem:[%s1917_s28 + $0x10] sm:$0xff]   ;;  %v612_v25 = vstv %s1030_s17  ;;  %p1033_p1 = scmp.ne.s32.totalorder %s1501_s24, 3 }
  0xd9   : > { %1045 = vmatprep.subr.bf16.mxu0 %v1202_v2  ;;  %v1208_v9 = vld [vmem:[%s1917_s28 + $0x58] sm:$0xff]   ;;  %v1210_v11 = vld [vmem:[%s1917_s28 + $0x60] sm:$0xff]   ;;  %v1212_v13 = vld [vmem:[%s1917_s28 + $0x68] sm:$0xff]   ;;  %v610_v24 = vand.u32 127, %v609_v23 }
  0xda   : > { %1046 = vmatpush3.bf16.msra.mxu0 %v1203_v3  ;;  %v1209_v10 = vld [vmem:[%s1917_s28 + $0x18] sm:$0xff]   ;;  %v1211_v12 = vld [vmem:[%s1917_s28 + $0x20] sm:$0xff]   ;;  %v1213_v16 = vld [vmem:[%s1917_s28 + $0x28] sm:$0xff]  }
  0xdb   : > { %1047 = vmatprep.subr.bf16.mxu0 %v1204_v5  ;;  %v1220_v14 = vld [vmem:[%s326_s0 + $0x4] ss:$8 sps:$4 sm:$0xff]   ;;  %v1218_v22 = vld [vmem:[%s326_s0] ss:$8 sps:$4 sm:$0xff]   ;;  %v1963_v26 = vadd.s32 %v612_v25, %v610_v24 }
  0xdc   : > { %v607_v15 = vld [vmem:[%s344_s21] sm:$0xff]  ;;  %598 = vmatprep.mubr.bf16.mxu0 %v1220_v14  ;;  %v608_v17 = vld [vmem:[%s344_s21 + $0x8] sm:$0xff] }
  0xdd   : > { %615 = vperm.xlu0 %1200, %v607_v15   ;;  %v1214_v18 = vld [vmem:[%s1917_s28 + $0x70] sm:$0xff]   ;;  %v1216_v20 = vld [vmem:[%s1917_s28 + $0x78] sm:$0xff]  }
  0xde   : > { %1048 = vmatpush3.bf16.msra.mxu0 %v1205_v6  ;;  %v1215_v19 = vld [vmem:[%s1917_s28 + $0x30] sm:$0xff]   ;;  %v1217_v21 = vld [vmem:[%s1917_s28 + $0x38] sm:$0xff]  }
  0xdf   : > { %1049 = vmatprep.subr.bf16.mxu0 %v1206_v7  ;;  %v630_v37 = vld [vmem:[%s362_s9] sm:$0xff]  ;;  %v631_v40 = vld [vmem:[%s362_s9 + $0x8] sm:$0xff] }
  0xe1   : > { %618 = vperm.xlu0 %1200, %v608_v17  }
  0xe2   : > { %1050 = vmatpush3.bf16.msra.mxu0 %v1207_v8 }
  0xe3   : > { %1051 = vmatprep.subr.bf16.mxu0 %v1208_v9 }
  0xe6   : > { %1052 = vmatpush3.bf16.msra.mxu0 %v1209_v10 }
  0xe7   : > { %1053 = vmatprep.subr.bf16.mxu0 %v1210_v11 }
  0xea   : > { %1054 = vmatpush3.bf16.msra.mxu0 %v1211_v12 }
  0xeb   : > { %1055 = vmatprep.subr.bf16.mxu0 %v1212_v13 }
  0xee   : > { %1056 = vmatpush3.bf16.msra.mxu0 %v1213_v16 }
  0xef   : > { %1057 = vmatprep.subr.bf16.mxu0 %v1214_v18 }
  0xf2   : > { %1058 = vmatpush3.bf16.msra.mxu0 %v1215_v19 }
  0xf3   : > { %1059 = vmatprep.subr.bf16.mxu0 %v1216_v20 }
  0xf6   : > { %1060 = vmatpush3.bf16.msra.mxu0 %v1217_v21 }
  0xf9   : > { %599 = vmatmul.mubr.bf16.vlgmr.msra.gmra.mrb[0].mxu0 %v1218_v22 }
 0x15c   : > { %v1965_v27 = vpop.permute.xlu0 %615 }
 0x15d   : > { %vm620_vm1 = vcmp.eq.s32.totalorder %v1963_v26, %v1965_v27  ;;  %v728_v27 = vld [vmem:[#allocation4] sm:$0xff] }
 0x160   : > { %v1971_v33 = vpop.permute.xlu0 %618 }
 0x161   : > { %vm621_vm2 = vcmp.eq.s32.totalorder %v1963_v26, %v1971_v33  ;;  %v729_v26 = vld [vmem:[#allocation4 + $0x8] sm:$0xff] }
 0x1cc   : > { %v1061_v28 = vpop.f32.mrb[0].mxu0 }
 0x1cd   : > { %v1062_v29 = vpop.f32.mrb[1].mxu0 }
 0x1ce   : > { %v1969_v30 = vadd.f32 %v1062_v29, %v1061_v28  ;;  %v1064_v31 = vpop.f32.mrb[2].mxu0 }
 0x1cf   : > { %v1065_v32 = vpop.f32.mrb[3].mxu0 }
 0x1d0   : > { %v1973_v34 = vadd.f32 %v1065_v32, %v1064_v31  ;;  %v622_v35 = vsel %vm620_vm1, %v1969_v30, 0.0  ;;  %v628_v31 = vld [vmem:[%s353_s25] sm:$0xff] }
 0x1d1   : > { %624 = vadd.xlane.f32.xlu1 %v622_v35 }
 0x1d2   : > { %v623_v36 = vsel %vm621_vm2, %v1973_v34, 0.0 }
 0x1d5   : > { %626 = vadd.xlane.f32.xlu1 %v623_v36 }
 0x25e   : > { %v625_v38 = vpop.xlane.xlu1 %624 }
 0x25f   : > { %v632_v39 = vmul.f32 %v630_v37, %v625_v38 }
 0x261   : > { %v1031_v41 = vclamps-f32 %v632_v39, 1.0 }
 0x262   : > { %v627_v42 = vpop.xlane.xlu1 %626 }
 0x263   : > { %v633_v43 = vmul.f32 %v631_v40, %v627_v42  ;;  %vm638_vm3 = vcmp.le.f32.partialorder %v1031_v41, 0.5  ;;  %vm644_vm4 = vcmp.le.f32.partialorder %v1031_v41, -0.5  ;;  %vm650_vm5 = vcmp.le.f32.partialorder %v1031_v41, -1.0  ;;  %v629_v40 = vld [vmem:[%s353_s25 + $0x8] sm:$0xff] }
 0x264   : > { %v640_v45 = vsel %vm638_vm3, 1.0, %v1532_v44  ;;  %v646_v46 = vsel %vm644_vm4, 1.0, %v1532_v44  ;;  %v652_v49 = vsel %vm650_vm5, 1.0, %v1532_v44  ;;  %v656_v0 = vmul.f32 4.0, %v1031_v41 }
 0x265   : > { %v1032_v47 = vclamps-f32 %v633_v43, 1.0  ;;  %v648_v48 = vadd.f32 %v646_v46, %v640_v45  ;;  %v662_v17 = vmul.f32 3.0, %v1031_v41  ;;  %vm734_vm3 = vcmask 7168  }
 0x266   : > { %v658_v6 = vmul.f32 %v1031_v41, %v656_v0 }
 0x267   : > { %v654_v50 = vadd.f32 %v652_v49, %v648_v48  ;;  %vm639_vm6 = vcmp.le.f32.partialorder %v1032_v47, 0.5  ;;  %vm645_vm7 = vcmp.le.f32.partialorder %v1032_v47, -0.5  ;;  %vm651_vm8 = vcmp.le.f32.partialorder %v1032_v47, -1.0  ;;  %v737_v48 = vld [vmem:[#allocation2] sm:$0xff] }
 0x268   : > { %v641_v51 = vsel %vm639_vm6, 1.0, %v1532_v44  ;;  %v647_v52 = vsel %vm645_vm7, 1.0, %v1532_v44  ;;  %v653_v55 = vsel %vm651_vm8, 1.0, %v1532_v44  ;;  %v657_v7 = vmul.f32 4.0, %v1032_v47 }
 0x269   : > { %v666_v53 = vand.u32 2147483647, %v654_v50  ;;  %v649_v54 = vadd.f32 %v647_v52, %v641_v51  ;;  %v675_v4 = vand.u32 2147483648, %v654_v50  ;;  %v660_v13 = vmul.f32 %v1031_v41, %v658_v6  ;;  %v738_v51 = vld [vmem:[#allocation2 + $0x8] sm:$0xff] }
 0x26a   : > { %v659_v14 = vmul.f32 %v1032_v47, %v657_v7  ;;  %v704_v25 = vmul.f32 2.0, %v654_v50  ;;  %v663_v28 = vmul.f32 3.0, %v1032_v47  ;;  %v751_v7 = vld [vmem:[#allocation3] sm:$0xff] }
 0x26b   : > { %v668_v56 = vmul.f32 0.5, %v666_v53  ;;  %v655_v57 = vadd.f32 %v653_v55, %v649_v54  ;;  %v664_v20 = vsub.f32 %v660_v13, %v662_v17  ;;  %v723_v55 = vsel %vm621_vm2, 1.0, %v1532_v44 }
 0x26c   : > { %v661_v22 = vmul.f32 %v1032_v47, %v659_v14 }
 0x26d   : > { %v669_v58 = vfloor.f32 %v668_v56  ;;  %v677_v59 = vand.u32 2147483647, %v655_v57  ;;  %v686_v10 = vand.u32 2147483648, %v655_v57  ;;  %v705_v39 = vmul.f32 2.0, %v655_v57 }
 0x26e   : > { %v665_v35 = vsub.f32 %v661_v22, %v663_v28 }
 0x26f   : > { %v670_v60 = vmul.f32 2.0, %v669_v58  ;;  %v679_v61 = vmul.f32 0.5, %v677_v59 }
 0x271   : > { %v671_v62 = vsub.f32 %v666_v53, %v670_v60  ;;  %v680_v63 = vfloor.f32 %v679_v61 }
 0x273   : > { %vm672_vm9 = vcmp.eq.f32.partialorder %v671_v62, 2.0  ;;  %v681_v1 = vmul.f32 2.0, %v680_v63 }
 0x274   : > { %v673_v2 = vsel %vm672_vm9, 0.0, %v671_v62 }
 0x275   : > { %v674_v3 = vand.u32 2147483647, %v673_v2  ;;  %v682_v5 = vsub.f32 %v677_v59, %v681_v1 }
 0x277   : > { %v676_v8 = vor.u32 %v675_v4, %v674_v3  ;;  %vm683_vm10 = vcmp.eq.f32.partialorder %v682_v5, 2.0 }
 0x278   : > { %v684_v9 = vsel %vm683_vm10, 0.0, %v682_v5 }
 0x279   : > { %vm688_vm11 = vcmp.ne.f32.partialorder %v676_v8, 0.0  ;;  %vm690_vm12 = vcmp.lt.f32.partialorder %v676_v8, 0.0  ;;  %v694_v11 = vadd.f32 2.0, %v676_v8  ;;  %v685_v12 = vand.u32 2147483647, %v684_v9 }
 0x27a   : > { %vm692_vm13 = vmand %vm690_vm12, %vm688_vm11 }
 0x27b   : > { %v696_v15 = vsel %vm692_vm13, %v694_v11, %v676_v8  ;;  %v687_v16 = vor.u32 %v686_v10, %v685_v12  ;;  %v752_v11 = vld [vmem:[#allocation3 + $0x8] sm:$0xff] }
 0x27c   : > { %v698_v18 = vmul.f32 2.0, %v696_v15 }
 0x27d   : > { %vm689_vm14 = vcmp.ne.f32.partialorder %v687_v16, 0.0  ;;  %vm691_vm15 = vcmp.lt.f32.partialorder %v687_v16, 0.0  ;;  %v695_v19 = vadd.f32 2.0, %v687_v16 }
 0x27e   : > { %v700_v21 = vsub.f32 1.0, %v698_v18  ;;  %vm693_vm0 = vmand %vm691_vm15, %vm689_vm14 }
 0x27f   : > { %v697_v23 = vsel %vm693_vm0, %v695_v19, %v687_v16 }
 0x280   : > { %v702_v24 = vmul.f32 %v700_v21, %v664_v20  ;;  %v699_v29 = vmul.f32 2.0, %v697_v23 }
 0x282   : > { %v706_v32 = vsub.f32 %v702_v24, %v704_v25  ;;  %v701_v36 = vsub.f32 1.0, %v699_v29 }
 0x284   : > { %v708_v37 = vmul.f32 %v706_v32, %v628_v31  ;;  %v703_v38 = vmul.f32 %v701_v36, %v665_v35 }
 0x286   : > { %712 = vperm.xlu0 %1200, %v708_v37   ;;  %v707_v41 = vsub.f32 %v703_v38, %v705_v39 }
 0x288   : > { %v709_v42 = vmul.f32 %v707_v41, %v629_v40 }
 0x28a   : > { %717 = vperm.xlu1 %1201, %v709_v42  }
 0x305   : > { %v713_v43 = vpop.permute.xlu0 %712 }
 0x306   : > { %v720_v45 = vsel %vm620_vm1, %v713_v43, %v1969_v30 }
 0x307   : > { %739 = vmax.xlane.f32.xlu0 %v720_v45 }
 0x309   : > { %v718_v46 = vpop.permute.xlu1 %717 }
 0x30a   : > { %v721_v47 = vsel %vm621_vm2, %v718_v46, %v1973_v34  ;;  %v722_v34 = vsel %vm620_vm1, 1.0, %v1532_v44 }
 0x30b   : > { %741 = vmax.xlane.f32.xlu1 %v721_v47 }
 0x394   : > { %v740_v49 = vpop.xlane.xlu0 %739 }
 0x395   : > { %v743_v50 = vmax.f32 %v737_v48, %v740_v49 }
 0x397   : > { %v745_v52 = vsub.f32 %v737_v48, %v743_v50  ;;  %779 = vst.msk [vmem:[#allocation2] sm:$0xff] %vm734_vm3, %v743_v50  ;;  %757 = vperm.xlu0 %1200, %v743_v50  }
 0x398   : > { %v742_v53 = vpop.xlane.xlu1 %741 }
 0x399   : > { %v744_v54 = vmax.f32 %v738_v51, %v742_v53  ;;  %v747_v4 = vmul.f32 1.442695, %v745_v52 }
 0x39b   : > { %v746_v30 = vsub.f32 %v738_v51, %v744_v54  ;;  %780 = vst.msk [vmem:[#allocation2 + $0x8] sm:$0xff] %vm734_vm3, %v744_v54  ;;  %762 = vperm.xlu1 %1201, %v744_v54  }
 0x39d   : > { %v749_v5 = vmul.f32 1.442695, %v746_v30 }
 0x39e   : > { %v785_v19 = vld [vmem:[#allocation2] sm:$0xff] (!%p1033_p1) }
 0x3a2   : > { %v786_v22 = vld [vmem:[#allocation2 + $0x8] sm:$0xff] (!%p1033_p1) }
 0x3b6   : > { %724 = vadd.xlane.f32.xlu0 %v722_v34 }
 0x3bf   : > { %726 = vadd.xlane.f32.xlu1 %v723_v55 }
 0x416   : > { %v758_v56 = vpop.permute.xlu0 %757 }
 0x417   : > { %v765_v57 = vsub.f32 %v720_v45, %v758_v56 }
 0x419   : > { %v767_v58 = vmul.f32 1.442695, %v765_v57 }
 0x41a   : > { %v763_v59 = vpop.permute.xlu1 %762 }
 0x41b   : > { %1221 = vpow2.f32 %v767_v58  ;;  %v766_v60 = vsub.f32 %v721_v47, %v763_v59 }
 0x41d   : > { %v769_v61 = vmul.f32 1.442695, %v766_v60 }
 0x41f   : > { %1223 = vpow2.f32 %v769_v61 }
 0x420   : > { %1225 = vpow2.f32 %v747_v4 }
 0x421   : > { %1227 = vpow2.f32 %v749_v5 }
 0x425   : > { %v1222_v62 = vpop.eup %1221 }
 0x426   : > { %771 = vadd.xlane.f32.xlu0 %v1222_v62 }
 0x429   : > { %v1224_v63 = vpop.eup %1223 }
 0x42a   : > { %773 = vadd.xlane.f32.xlu0 %v1224_v63  ;;  %v1226_v6 = vpop.eup %1225 }
 0x42b   : > { %v753_v8 = vmul.f32 %v1226_v6, %v751_v7  ;;  %v1228_v9 = vpop.eup %1227 }
 0x42c   : > { %v754_v13 = vmul.f32 %v1228_v9, %v752_v11 }
 0x443   : > { %v725_v0 = vpop.xlane.xlu0 %724 }
 0x444   : > { %v730_v1 = vmul.f32 %v725_v0, %v708_v37 }
 0x446   : > { %v732_v2 = vadd.f32 %v730_v1, %v728_v27 }
 0x448   : > { %735 = vst.msk [vmem:[#allocation4] sm:$0xff] %vm734_vm3, %v732_v2 }
 0x44c   : > { %v727_v33 = vpop.xlane.xlu1 %726 }
 0x44d   : > { %v731_v44 = vmul.f32 %v727_v33, %v709_v42 }
 0x44f   : > { %v733_v3 = vadd.f32 %v731_v44, %v729_v26  ;;  %v795_v23 = vld [vmem:[#allocation4] sm:$0xff] (!%p1033_p1) }
 0x451   : > { %736 = vst.msk [vmem:[#allocation4 + $0x8] sm:$0xff] %vm734_vm3, %v733_v3 }
 0x458   : > { %v796_v28 = vld [vmem:[#allocation4 + $0x8] sm:$0xff] (!%p1033_p1) }
 0x4b3   : > { %v772_v10 = vpop.xlane.xlu0 %771 }
 0x4b4   : > { %v775_v12 = vadd.f32 %v772_v10, %v753_v8  ;;  %784 = sbr.rel (%p1033_p1) target bundleno = 1236 (0x4d4), region = 68 }
 0x4b6   : > { %777 = vst.msk [vmem:[#allocation3] sm:$0xff] %vm734_vm3, %v775_v12 }
 0x4b7   : > { %v774_v14 = vpop.xlane.xlu0 %773 }
 0x4b8   : > { %v776_v15 = vadd.f32 %v774_v14, %v754_v13 }
 0x4ba   : > { %778 = vst.msk [vmem:[#allocation3 + $0x8] sm:$0xff] %vm734_vm3, %v776_v15 }
 0x4bd   : > { %v787_v16 = vld [vmem:[#allocation3] sm:$0xff] }
 0x4be   : > { %1229 = vlog2.f32 %v787_v16 }
 0x4c1   : > { %v788_v17 = vld [vmem:[#allocation3 + $0x8] sm:$0xff] }
 0x4c2   : > { %1231 = vlog2.f32 %v788_v17 }
 0x4c8   : > { %v1230_v18 = vpop.eup %1229 }
 0x4c9   : > { %v790_v21 = vmul.f32 0.6931472, %v1230_v18 }
 0x4cb   : > { %v793_v25 = vadd.f32 %v790_v21, %v785_v19 }
 0x4cc   : > { %v1232_v20 = vpop.eup %1231 }
 0x4cd   : > { %v792_v24 = vmul.f32 0.6931472, %v1232_v20  ;;  %v797_v31 = vsub.f32 %v793_v25, %v795_v23 }
 0x4cf   : > { %v794_v29 = vadd.f32 %v792_v24, %v786_v22  ;;  %799 = vst.msk [vmem:[%s1935_s23] sm:$0xff] %vm734_vm3, %v797_v31 }
 0x4d1   : > { %v798_v32 = vsub.f32 %v794_v29, %v796_v28 }
 0x4d3   : > { %800 = vst.msk [vmem:[%s1935_s23 + $0x8] sm:$0xff] %vm734_vm3, %v798_v32 }
 0x4d4 PF: > { %s2166_s24 = sld [smem:[#allocation23_spill]]  ;;  %s2167_s27 = sld [smem:[#allocation30_spill]] }
 0x4d5   : > { %s2168_s6 = sld [smem:[#allocation36_spill]]  ;;  %s815_s13 = sshll.u32 %s1935_s23, 4  ;;  %s2033_s13 = int_to_ptr.vmem [resolvable:$true] %s815_s13 }
 0x4d6   : > { %s802_s5 = scalar_lea.sflag [#allocation7], %s1904_s20  ;;  %s1383_s12 = scalar_lea.vmem %s2033_s13, 256 }
 0x4d7   : > { %p1384_p6 = scmp.ne.s32.totalorder %s2033_s13, %s1383_s12  ;;  %s1533_s11 = smov [#allocation14]  }
 0x4d8   : > { %s1387_s30 = sshll.u32 %s1533_s11, 4  ;;  %s1388_s30 = int_to_ptr.vmem [resolvable:$false] %s1387_s30 }
 0x4d9   : > { %s1389_s16 = scalar_lea.vmem %s1388_s30, 512  ;;  %p1390_p11 = scmp.lt.s32.totalorder %s2033_s13, %s1388_s30 }
 0x4da   : > { %s1044_s7 = sshll.u32 %s2166_s24, 8  ;;  %p2169_p4 = scmp.ne.s32.totalorder %s2167_s27, 0 }
 0x4db   : > { %s2030_s14 = scalar_lea.hbm %s2168_s6, %s1044_s7  ;;  %p1391_p5 = scmp.lt.s32.totalorder %s1389_s16, %s1383_s12 }
 0x4dc   : > { %p1385_p0 = pnand %p1384_p6, %p2169_p4 }
 0x4dd   : > { %p1392_p13 = por %p1391_p5, %p1390_p11 }
 0x4de   : > { %p1386_p2 = pneg %p1385_p0 }
 0x4e0   : > { %p1393_p12 = pnand %p1392_p13, %p1386_p2 }
 0x4e2   : > { %1396 = shalt.err (!%p1393_p12)
}
 0x4e3   : > { %s1397_s26 = scalar_lea.hbm %s2030_s14, 256  ;;  %s1401_s18 = scalar_lea.hbm %s2168_s6, 1024 }
 0x4e4   : > { %p1398_p7 = scmp.ne.s32.totalorder %s2030_s14, %s1397_s26  ;;  %p1402_p8 = scmp.lt.u32.totalorder %s2030_s14, %s2168_s6 }
 0x4e5   : > { %p1403_p3 = scmp.lt.u32.totalorder %s1401_s18, %s1397_s26  ;;  %p1405_p6 = scmp.lt.u32.totalorder %s1397_s26, %s2030_s14 }
 0x4e6   : > { %p1399_p9 = pnand %p1398_p7, %p2169_p4 }
 0x4e7   : > { %p1404_p1 = por %p1403_p3, %p1402_p8 }
 0x4e8   : > { %p1400_p10 = pneg %p1399_p9 }
 0x4e9   : > { %p1406_p0 = por %p1405_p6, %p1404_p1 }
 0x4eb   : > { %p1407_p2 = pnand %p1406_p0, %p1400_p10 }
 0x4ed   : > { %1410 = shalt.err (!%p1407_p2)
}
 0x4ee   : > { %s1534_s28 = smov 128   ;;  %s1535_s21 = smov 8  }
 0x4ef   : > { %1077 = dma.vmem_to_hbm [thread:$0]  (%p2169_p4), %s2033_s13, 256, %s2030_s14, %s802_s5, %s1534_s28, %s1534_s28, %s1535_s21  }
 0x4f0 PF: > { %s2170_s29 = sld [smem:[#allocation26_spill]]  ;;  %s2171_s25 = sld [smem:[#allocation21_spill]] }
 0x4f1   : > { %s2172_s9 = sld [smem:[#allocation31_spill]] }
 0x4f6   : > { %p1100_p11 = scmp.ge.s32.totalorder %s2170_s29, 2  ;;  %s830_s23 = sand.u32 1, %s2171_s25  }
 0x4f7   : > { %p2173_p5 = scmp.ne.s32.totalorder %s2172_s9, 0  ;;  %s831_s17 = scalar_lea.sflag [#allocation7], %s830_s23 }
 0x4f9   : > { %p1096_p13 = pnand %p1100_p11, %p2173_p5 }
 0x4fb   : > { %1472 = dma.done.wait (!%p1096_p13), %s831_s17, 256  }
 0x4fc   : > { %1474 = vsyncadd (!%p1096_p13), %s831_s17, 4294967040  ;;  %s27_s28 = sadd.s32 1, %s2170_s29   ;;  %s2174_s24 = sld [smem:[#allocation20_spill]] }
 0x4fd   : > { %p24_p12 = scmp.ge.s32.totalorder %s27_s28, 18   ;;  %s2175_s20 = sld [smem:[#allocation28_spill]] }
 0x4fe   : > { %s2176_s27 = sld [smem:[#allocation22_spill]]  ;;  %s2177_s23 = sld [smem:[#allocation32_spill]] }
 0x4ff   : > { %s2178_s7 = sld [smem:[#allocation24_spill]]  ;;  %s2179_s25 = sld [smem:[#allocation25_spill]] }
 0x500   : > { %s2180_s26 = sld [smem:[#allocation27_spill]]  ;;  %s2181_s8 = sld [smem:[#allocation29_spill]] }
 0x501   : > { %s2182_s18 = smov %s1481_s19  ;;  %s2184_s21 = smov %s1493_s22 }
 0x502   : > { %s2183_s19 = smov %s2174_s24  ;;  %26 = sbr.rel (!%p24_p12) target bundleno = 18 (0x12), region = 141 }
 0x504   : > { %s2185_s22 = smov %s2176_s27 }
 0x505   : > { %s2186_s24 = smov %s2178_s7 }
 0x506   : > { %s2187_s27 = smov %s2181_s8 }
 0x509   :  { %836 = vsyncpa [#allocation6], 1 }
 0x50a   :  { %838 = vsyncpa [#allocation6 + $0x1], 1 }
 0x50b   :  { %839 = vsyncpa [#allocation9], 1 }
 0x50c   :  { %841 = vsyncpa [#allocation9 + $0x1], 1 }
 0x50d   :  { %842 = vsyncpa [#allocation12], 1 }
 0x50e   :  { %844 = vsyncpa [#allocation12 + $0x1], 1 }
 0x50f   :  { %845 = vsyncpa [#allocation7], 1 }
 0x510   :  { %847 = vsyncpa [#allocation7 + $0x1], 1 }

</bundles_post_ra>
